<compile_context>
chip_gen: v7x
topology: tpu7x:2x2x1
jax: 0.10.0
libtpu: 0.0.40
codegen_flags: <defaults>
</compile_context>

<pallas_src>
import jax
import jax.numpy as jnp
from jax.experimental import pallas as pl
from jax.experimental.pallas import tpu as pltpu

Q_PAD = 8  # final layer padded from 1 to 8 output columns (f32 sublane granularity)


def _round_up(n, m):
    return ((n + m - 1) // m) * m


def _make_critic_kernel(n_seg, n_crit, compute_dtype):
    """Fused 4-layer MLP kernel for `n_seg` input segments and `n_crit` critics that
    share the same (tile_b, d_j) input tiles."""
    per_critic = n_seg + 7  # [w1 segments...], b1, w2, b2, w3, b3, w4, b4

    def kernel(*refs):
        # Load each input segment once; reused by all critics.
        x = [refs[j][...] for j in range(n_seg)]                      # (tile_b, d_j)
        for c in range(n_crit):
            p = refs[n_seg + c * per_critic: n_seg + (c + 1) * per_critic]
            w1 = p[:n_seg]
            b1, w2, b2, w3, b3, w4, b4 = p[n_seg:]
            out_ref = refs[n_seg + n_crit * per_critic + c]

            # fc1: accumulate per-segment partial products (== concat(x) @ W1)
            h = jnp.dot(x[0], w1[0][...], preferred_element_type=jnp.float32)
            for j in range(1, n_seg):
                h = h + jnp.dot(x[j], w1[j][...], preferred_element_type=jnp.float32)
            h = jnp.maximum(h + b1[...], 0.0).astype(compute_dtype)  # (tile_b, 128)

            h = jnp.dot(h, w2[...], preferred_element_type=jnp.float32) + b2[...]
            h = jnp.maximum(h, 0.0).astype(compute_dtype)            # (tile_b, 64)

            h = jnp.dot(h, w3[...], preferred_element_type=jnp.float32) + b3[...]
            h = jnp.maximum(h, 0.0).astype(compute_dtype)            # (tile_b, 32)

            q = jnp.dot(h, w4[...], preferred_element_type=jnp.float32) + b4[...]
            out_ref[...] = q.astype(out_ref.dtype)                   # (tile_b, Q_PAD)

    return kernel


def critic_forward(states, actions, params, *, tile_b=1024,
                   compute_dtype=jnp.float32):
    """Fused Critic MLP forward.

    states/actions: lists of (batch, d_i) arrays (match the PyTorch concat order).
    params: a dict with w1..w4 as (in, out) = nn.Linear.weight.T and b1..b4 as (1, out)
            (q_out has out=1), OR a list/tuple of such dicts — all critics are evaluated
            in one pallas_call sharing the same input DMA (e.g. critic + target critic).
    compute_dtype: dtype fed to the MXU (f32 or bf16); accumulation stays f32.
    Returns a (batch, 1) array, or a list of them when `params` is a sequence.
    """
    single = isinstance(params, dict)
    params_list = [params] if single else list(params)
    n_crit = len(params_list)

    segments = [jnp.asarray(s).astype(compute_dtype)
                for s in list(states) + list(actions)]
    seg_dims = [s.shape[1] for s in segments]
    n_seg = len(segments)
    batch = segments[0].shape[0]
    in_dim = sum(seg_dims)

    # Only pad batch to a multiple of 8 rows when needed (no-op for typical RL batches);
    # no padding to the tile size — the partial last block is handled by Pallas.
    batch_p = _round_up(batch, 8)
    if batch_p != batch:
        segments = [jnp.pad(s, ((0, batch_p - batch), (0, 0))) for s in segments]

    tile_b = _round_up(max(8, min(tile_b, batch_p)), 8)
    grid = (pl.cdiv(batch_p, tile_b),)

    inputs = list(segments)
    in_specs = [pl.BlockSpec((tile_b, d), lambda i: (i, 0)) for d in seg_dims]

    def resident(arr):
        # Same block every grid step -> stays VMEM-resident.
        return pl.BlockSpec(arr.shape, lambda i: (0, 0))

    weight_bytes = 0
    for p in params_list:
        assert p["w1"].shape[0] == in_dim, "w1 rows must equal sum of segment dims"
        # Split W1 row-wise per input segment:  concat(x) @ W1 == sum_j x_j @ W1_j
        off = 0
        for d in seg_dims:
            w1_j = p["w1"][off:off + d, :].astype(compute_dtype)
            off += d
            inputs.append(w1_j)
            in_specs.append(resident(w1_j))
            weight_bytes += w1_j.size * w1_j.dtype.itemsize
        b1 = p["b1"].astype(jnp.float32)
        w2 = p["w2"].astype(compute_dtype)
        b2 = p["b2"].astype(jnp.float32)
        w3 = p["w3"].astype(compute_dtype)
        b3 = p["b3"].astype(jnp.float32)
        # Pad the final layer from 1 to Q_PAD output columns (zero cols => col 0 is q).
        w4 = jnp.pad(p["w4"], ((0, 0), (0, Q_PAD - p["w4"].shape[1]))).astype(compute_dtype)
        b4 = jnp.pad(p["b4"], ((0, 0), (0, Q_PAD - p["b4"].shape[1]))).astype(jnp.float32)
        for a in (b1, w2, b2, w3, b3, w4, b4):
            inputs.append(a)
            in_specs.append(resident(a))
            weight_bytes += a.size * a.dtype.itemsize

    out_shape = [jax.ShapeDtypeStruct((batch_p, Q_PAD), jnp.float32)
                 for _ in range(n_crit)]
    out_specs = [pl.BlockSpec((tile_b, Q_PAD), lambda i: (i, 0))
                 for _ in range(n_crit)]

    in_bytes = sum(s.size * s.dtype.itemsize for s in segments)
    out_bytes = n_crit * batch_p * Q_PAD * 4
    flops = 2 * batch_p * n_crit * (in_dim * 128 + 128 * 64 + 64 * 32 + 32 * Q_PAD)

    outs = pl.pallas_call(
        _make_critic_kernel(n_seg, n_crit, compute_dtype),
        out_shape=out_shape,
        grid=grid,
        in_specs=in_specs,
        out_specs=out_specs,
        compiler_params=pltpu.CompilerParams(
            # Batch tiles are independent -> shard across TensorCores on v7x.
            dimension_semantics=("parallel",),
        ),
        cost_estimate=pl.CostEstimate(flops=flops, transcendentals=0,
                                      bytes_accessed=in_bytes + weight_bytes + out_bytes),
    )(*inputs)

    qs = [o[:batch, :1] for o in outs]
    return qs[0] if single else qs


def init_critic_params(key, in_dim):
    """Synthetic init matching nn.Linear shapes; weights stored as (in, out) = weight.T."""
    dims = [(in_dim, 128), (128, 64), (64, 32), (32, 1)]
    params = {}
    for i, (din, dout) in enumerate(dims, start=1):
        key, kw, kb = jax.random.split(key, 3)
        bound = 1.0 / (din ** 0.5)  # PyTorch default init bound
        params[f"w{i}"] = jax.random.uniform(
            kw, (din, dout), jnp.float32, minval=-bound, maxval=bound)
        params[f"b{i}"] = jax.random.uniform(
            kb, (1, dout), jnp.float32, minval=-bound, maxval=bound)
    return params


def critic_reference(states, actions, params):
    """Pure-JAX reference for correctness check."""
    x = jnp.concatenate(list(states) + list(actions), axis=1)
    h = jnp.maximum(x @ params["w1"] + params["b1"], 0.0)
    h = jnp.maximum(h @ params["w2"] + params["b2"], 0.0)
    h = jnp.maximum(h @ params["w3"] + params["b3"], 0.0)
    return h @ params["w4"] + params["b4"]


if __name__ == "__main__":
    key = jax.random.PRNGKey(0)
    batch = 2
    obs_shape = [16, 16, 16]       # args.obs_shape (3 agents)
    action_shape = [8, 8, 8]       # args.action_shape (3 agents)
    in_dim = sum(obs_shape) + sum(action_shape)   # 72

    key, kp, kt = jax.random.split(key, 3)
    params = init_critic_params(kp, in_dim)
    target_params = init_critic_params(kt, in_dim)

    states, actions = [], []
    for d in obs_shape:
        key, k = jax.random.split(key)
        states.append(jax.random.normal(k, (batch, d), dtype=jnp.float32))
    for d in action_shape:
        key, k = jax.random.split(key)
        actions.append(jax.random.normal(k, (batch, d), dtype=jnp.float32))

    ref = critic_reference(states, actions, params)
    ref_t = critic_reference(states, actions, target_params)

    # 1) f32 path.
    q = jax.block_until_ready(critic_forward(states, actions, params))
    assert q.shape == (batch, 1)
    assert jnp.allclose(q, ref, atol=1e-4, rtol=1e-4), "f32 mismatch vs reference"

    # 2) Fused critic + target-critic in one pallas_call (shares the x DMA).
    q_c, q_t = critic_forward(states, actions, [params, target_params])
    jax.block_until_ready((q_c, q_t))
    assert jnp.allclose(q_c, ref, atol=1e-4, rtol=1e-4), "fused critic mismatch"
    assert jnp.allclose(q_t, ref_t, atol=1e-4, rtol=1e-4), "fused target mismatch"

    # 3) bf16-input path (f32 accumulation) with relaxed tolerance vs f32 reference.
    q_bf16 = jax.block_until_ready(
        critic_forward(states, actions, params, compute_dtype=jnp.bfloat16))
    assert jnp.allclose(q_bf16, ref, atol=5e-2, rtol=5e-2), "bf16 mismatch vs reference"

    print("KERNEL_OK")
</pallas_src>

<mosaic_0001>
module attributes {stable_mosaic.version = 11 : i64} {
  func.func @kernel(%arg0: i32, %arg1: memref<8x16xf32, #tpu.memory_space<vmem>>, %arg2: memref<8x16xf32, #tpu.memory_space<vmem>>, %arg3: memref<8x16xf32, #tpu.memory_space<vmem>>, %arg4: memref<8x8xf32, #tpu.memory_space<vmem>>, %arg5: memref<8x8xf32, #tpu.memory_space<vmem>>, %arg6: memref<8x8xf32, #tpu.memory_space<vmem>>, %arg7: memref<16x128xf32, #tpu.memory_space<vmem>>, %arg8: memref<16x128xf32, #tpu.memory_space<vmem>>, %arg9: memref<16x128xf32, #tpu.memory_space<vmem>>, %arg10: memref<8x128xf32, #tpu.memory_space<vmem>>, %arg11: memref<8x128xf32, #tpu.memory_space<vmem>>, %arg12: memref<8x128xf32, #tpu.memory_space<vmem>>, %arg13: memref<1x128xf32, #tpu.memory_space<vmem>>, %arg14: memref<128x64xf32, #tpu.memory_space<vmem>>, %arg15: memref<1x64xf32, #tpu.memory_space<vmem>>, %arg16: memref<64x32xf32, #tpu.memory_space<vmem>>, %arg17: memref<1x32xf32, #tpu.memory_space<vmem>>, %arg18: memref<32x8xf32, #tpu.memory_space<vmem>>, %arg19: memref<1x8xf32, #tpu.memory_space<vmem>>, %arg20: memref<8x8xf32, #tpu.memory_space<vmem>>) attributes {dimension_semantics = [#tpu.dimension_semantics<parallel>], iteration_bounds = array<i64: 1>, scalar_prefetch = 0 : i64, scratch_operands = 0 : i64, tpu.core_type = #tpu.core_type<tc>, window_params = [{transform_indices = @transform_0, window_bounds = array<i64: 8, 16>}, {transform_indices = @transform_1, window_bounds = array<i64: 8, 16>}, {transform_indices = @transform_2, window_bounds = array<i64: 8, 16>}, {transform_indices = @transform_3, window_bounds = array<i64: 8, 8>}, {transform_indices = @transform_4, window_bounds = array<i64: 8, 8>}, {transform_indices = @transform_5, window_bounds = array<i64: 8, 8>}, {pipeline_mode = #tpu.pipeline_mode<synchronous>, transform_indices = @transform_6, window_bounds = array<i64: 16, 128>}, {pipeline_mode = #tpu.pipeline_mode<synchronous>, transform_indices = @transform_7, window_bounds = array<i64: 16, 128>}, {pipeline_mode = #tpu.pipeline_mode<synchronous>, transform_indices = @transform_8, window_bounds = array<i64: 16, 128>}, {pipeline_mode = #tpu.pipeline_mode<synchronous>, transform_indices = @transform_9, window_bounds = array<i64: 8, 128>}, {pipeline_mode = #tpu.pipeline_mode<synchronous>, transform_indices = @transform_10, window_bounds = array<i64: 8, 128>}, {pipeline_mode = #tpu.pipeline_mode<synchronous>, transform_indices = @transform_11, window_bounds = array<i64: 8, 128>}, {pipeline_mode = #tpu.pipeline_mode<synchronous>, transform_indices = @transform_12, window_bounds = array<i64: 1, 128>}, {pipeline_mode = #tpu.pipeline_mode<synchronous>, transform_indices = @transform_13, window_bounds = array<i64: 128, 64>}, {pipeline_mode = #tpu.pipeline_mode<synchronous>, transform_indices = @transform_14, window_bounds = array<i64: 1, 64>}, {pipeline_mode = #tpu.pipeline_mode<synchronous>, transform_indices = @transform_15, window_bounds = array<i64: 64, 32>}, {pipeline_mode = #tpu.pipeline_mode<synchronous>, transform_indices = @transform_16, window_bounds = array<i64: 1, 32>}, {pipeline_mode = #tpu.pipeline_mode<synchronous>, transform_indices = @transform_17, window_bounds = array<i64: 32, 8>}, {pipeline_mode = #tpu.pipeline_mode<synchronous>, transform_indices = @transform_18, window_bounds = array<i64: 1, 8>}, {transform_indices = @transform_19, window_bounds = array<i64: 8, 8>}]} {
    %c0 = arith.constant 0 : index
    %c0_0 = arith.constant 0 : index
    %0 = vector.load %arg1[%c0, %c0_0] : memref<8x16xf32, #tpu.memory_space<vmem>>, vector<8x16xf32>
    %c0_1 = arith.constant 0 : index
    %c0_2 = arith.constant 0 : index
    %1 = vector.load %arg2[%c0_1, %c0_2] : memref<8x16xf32, #tpu.memory_space<vmem>>, vector<8x16xf32>
    %c0_3 = arith.constant 0 : index
    %c0_4 = arith.constant 0 : index
    %2 = vector.load %arg3[%c0_3, %c0_4] : memref<8x16xf32, #tpu.memory_space<vmem>>, vector<8x16xf32>
    %c0_5 = arith.constant 0 : index
    %c0_6 = arith.constant 0 : index
    %3 = vector.load %arg4[%c0_5, %c0_6] : memref<8x8xf32, #tpu.memory_space<vmem>>, vector<8x8xf32>
    %c0_7 = arith.constant 0 : index
    %c0_8 = arith.constant 0 : index
    %4 = vector.load %arg5[%c0_7, %c0_8] : memref<8x8xf32, #tpu.memory_space<vmem>>, vector<8x8xf32>
    %c0_9 = arith.constant 0 : index
    %c0_10 = arith.constant 0 : index
    %5 = vector.load %arg6[%c0_9, %c0_10] : memref<8x8xf32, #tpu.memory_space<vmem>>, vector<8x8xf32>
    %c0_11 = arith.constant 0 : index
    %c0_12 = arith.constant 0 : index
    %6 = vector.load %arg7[%c0_11, %c0_12] : memref<16x128xf32, #tpu.memory_space<vmem>>, vector<16x128xf32>
    %cst = arith.constant dense<0.000000e+00> : vector<8x128xf32>
    %7 = tpu.matmul %0, %6, %cst {dimension_numbers = #tpu.dot_dimension_numbers<[1], [0], [0], [1], [0, 0, 1, 1], [], []>} : vector<8x16xf32>, vector<16x128xf32>, vector<8x128xf32> -> vector<8x128xf32>
    %c0_13 = arith.constant 0 : index
    %c0_14 = arith.constant 0 : index
    %8 = vector.load %arg8[%c0_13, %c0_14] : memref<16x128xf32, #tpu.memory_space<vmem>>, vector<16x128xf32>
    %cst_15 = arith.constant dense<0.000000e+00> : vector<8x128xf32>
    %9 = tpu.matmul %1, %8, %cst_15 {dimension_numbers = #tpu.dot_dimension_numbers<[1], [0], [0], [1], [0, 0, 1, 1], [], []>} : vector<8x16xf32>, vector<16x128xf32>, vector<8x128xf32> -> vector<8x128xf32>
    %10 = arith.addf %7, %9 : vector<8x128xf32>
    %c0_16 = arith.constant 0 : index
    %c0_17 = arith.constant 0 : index
    %11 = vector.load %arg9[%c0_16, %c0_17] : memref<16x128xf32, #tpu.memory_space<vmem>>, vector<16x128xf32>
    %cst_18 = arith.constant dense<0.000000e+00> : vector<8x128xf32>
    %12 = tpu.matmul %2, %11, %cst_18 {dimension_numbers = #tpu.dot_dimension_numbers<[1], [0], [0], [1], [0, 0, 1, 1], [], []>} : vector<8x16xf32>, vector<16x128xf32>, vector<8x128xf32> -> vector<8x128xf32>
    %13 = arith.addf %10, %12 : vector<8x128xf32>
    %c0_19 = arith.constant 0 : index
    %c0_20 = arith.constant 0 : index
    %14 = vector.load %arg10[%c0_19, %c0_20] : memref<8x128xf32, #tpu.memory_space<vmem>>, vector<8x128xf32>
    %cst_21 = arith.constant dense<0.000000e+00> : vector<8x128xf32>
    %15 = tpu.matmul %3, %14, %cst_21 {dimension_numbers = #tpu.dot_dimension_numbers<[1], [0], [0], [1], [0, 0, 1, 1], [], []>} : vector<8x8xf32>, vector<8x128xf32>, vector<8x128xf32> -> vector<8x128xf32>
    %16 = arith.addf %13, %15 : vector<8x128xf32>
    %c0_22 = arith.constant 0 : index
    %c0_23 = arith.constant 0 : index
    %17 = vector.load %arg11[%c0_22, %c0_23] : memref<8x128xf32, #tpu.memory_space<vmem>>, vector<8x128xf32>
    %cst_24 = arith.constant dense<0.000000e+00> : vector<8x128xf32>
    %18 = tpu.matmul %4, %17, %cst_24 {dimension_numbers = #tpu.dot_dimension_numbers<[1], [0], [0], [1], [0, 0, 1, 1], [], []>} : vector<8x8xf32>, vector<8x128xf32>, vector<8x128xf32> -> vector<8x128xf32>
    %19 = arith.addf %16, %18 : vector<8x128xf32>
    %c0_25 = arith.constant 0 : index
    %c0_26 = arith.constant 0 : index
    %20 = vector.load %arg12[%c0_25, %c0_26] : memref<8x128xf32, #tpu.memory_space<vmem>>, vector<8x128xf32>
    %cst_27 = arith.constant dense<0.000000e+00> : vector<8x128xf32>
    %21 = tpu.matmul %5, %20, %cst_27 {dimension_numbers = #tpu.dot_dimension_numbers<[1], [0], [0], [1], [0, 0, 1, 1], [], []>} : vector<8x8xf32>, vector<8x128xf32>, vector<8x128xf32> -> vector<8x128xf32>
    %22 = arith.addf %19, %21 : vector<8x128xf32>
    %c0_28 = arith.constant 0 : index
    %c0_29 = arith.constant 0 : index
    %23 = vector.load %arg13[%c0_28, %c0_29] : memref<1x128xf32, #tpu.memory_space<vmem>>, vector<1x128xf32>
    %24 = vector.broadcast %23 : vector<1x128xf32> to vector<8x128xf32>
    %25 = arith.addf %22, %24 : vector<8x128xf32>
    %cst_30 = arith.constant 0.000000e+00 : f32
    %26 = vector.broadcast %cst_30 : f32 to vector<8x128xf32>
    %27 = arith.maximumf %25, %26 : vector<8x128xf32>
    %c0_31 = arith.constant 0 : index
    %c0_32 = arith.constant 0 : index
    %28 = vector.load %arg14[%c0_31, %c0_32] : memref<128x64xf32, #tpu.memory_space<vmem>>, vector<128x64xf32>
    %cst_33 = arith.constant dense<0.000000e+00> : vector<8x64xf32>
    %29 = tpu.matmul %27, %28, %cst_33 {dimension_numbers = #tpu.dot_dimension_numbers<[1], [0], [0], [1], [0, 0, 1, 1], [], []>} : vector<8x128xf32>, vector<128x64xf32>, vector<8x64xf32> -> vector<8x64xf32>
    %c0_34 = arith.constant 0 : index
    %c0_35 = arith.constant 0 : index
    %30 = vector.load %arg15[%c0_34, %c0_35] : memref<1x64xf32, #tpu.memory_space<vmem>>, vector<1x64xf32>
    %31 = vector.broadcast %30 : vector<1x64xf32> to vector<8x64xf32>
    %32 = arith.addf %29, %31 : vector<8x64xf32>
    %cst_36 = arith.constant 0.000000e+00 : f32
    %33 = vector.broadcast %cst_36 : f32 to vector<8x64xf32>
    %34 = arith.maximumf %32, %33 : vector<8x64xf32>
    %c0_37 = arith.constant 0 : index
    %c0_38 = arith.constant 0 : index
    %35 = vector.load %arg16[%c0_37, %c0_38] : memref<64x32xf32, #tpu.memory_space<vmem>>, vector<64x32xf32>
    %cst_39 = arith.constant dense<0.000000e+00> : vector<8x32xf32>
    %36 = tpu.matmul %34, %35, %cst_39 {dimension_numbers = #tpu.dot_dimension_numbers<[1], [0], [0], [1], [0, 0, 1, 1], [], []>} : vector<8x64xf32>, vector<64x32xf32>, vector<8x32xf32> -> vector<8x32xf32>
    %c0_40 = arith.constant 0 : index
    %c0_41 = arith.constant 0 : index
    %37 = vector.load %arg17[%c0_40, %c0_41] : memref<1x32xf32, #tpu.memory_space<vmem>>, vector<1x32xf32>
    %38 = vector.broadcast %37 : vector<1x32xf32> to vector<8x32xf32>
    %39 = arith.addf %36, %38 : vector<8x32xf32>
    %cst_42 = arith.constant 0.000000e+00 : f32
    %40 = vector.broadcast %cst_42 : f32 to vector<8x32xf32>
    %41 = arith.maximumf %39, %40 : vector<8x32xf32>
    %c0_43 = arith.constant 0 : index
    %c0_44 = arith.constant 0 : index
    %42 = vector.load %arg18[%c0_43, %c0_44] : memref<32x8xf32, #tpu.memory_space<vmem>>, vector<32x8xf32>
    %cst_45 = arith.constant dense<0.000000e+00> : vector<8x8xf32>
    %43 = tpu.matmul %41, %42, %cst_45 {dimension_numbers = #tpu.dot_dimension_numbers<[1], [0], [0], [1], [0, 0, 1, 1], [], []>} : vector<8x32xf32>, vector<32x8xf32>, vector<8x8xf32> -> vector<8x8xf32>
    %c0_46 = arith.constant 0 : index
    %c0_47 = arith.constant 0 : index
    %44 = vector.load %arg19[%c0_46, %c0_47] : memref<1x8xf32, #tpu.memory_space<vmem>>, vector<1x8xf32>
    %45 = vector.broadcast %44 : vector<1x8xf32> to vector<8x8xf32>
    %46 = arith.addf %43, %45 : vector<8x8xf32>
    %c0_48 = arith.constant 0 : index
    %c0_49 = arith.constant 0 : index
    %47 = vector.load %arg20[%c0_48, %c0_49] : memref<8x8xf32, #tpu.memory_space<vmem>>, vector<8x8xf32>
    tpu.vector_store %arg20[%c0_48, %c0_49], %46 {strides = array<i32>} : memref<8x8xf32, #tpu.memory_space<vmem>>, vector<8x8xf32>,
    return
  }
  func.func @transform_0(%arg0: i32) -> (i32, i32) {
    %c0_i32 = arith.constant 0 : i32
    %c0_i32_0 = arith.constant 0 : i32
    return %arg0, %c0_i32 : i32, i32
  }
  func.func @transform_1(%arg0: i32) -> (i32, i32) {
    %c0_i32 = arith.constant 0 : i32
    %c0_i32_0 = arith.constant 0 : i32
    return %arg0, %c0_i32 : i32, i32
  }
  func.func @transform_2(%arg0: i32) -> (i32, i32) {
    %c0_i32 = arith.constant 0 : i32
    %c0_i32_0 = arith.constant 0 : i32
    return %arg0, %c0_i32 : i32, i32
  }
  func.func @transform_3(%arg0: i32) -> (i32, i32) {
    %c0_i32 = arith.constant 0 : i32
    %c0_i32_0 = arith.constant 0 : i32
    return %arg0, %c0_i32 : i32, i32
  }
  func.func @transform_4(%arg0: i32) -> (i32, i32) {
    %c0_i32 = arith.constant 0 : i32
    %c0_i32_0 = arith.constant 0 : i32
    return %arg0, %c0_i32 : i32, i32
  }
  func.func @transform_5(%arg0: i32) -> (i32, i32) {
    %c0_i32 = arith.constant 0 : i32
    %c0_i32_0 = arith.constant 0 : i32
    return %arg0, %c0_i32 : i32, i32
  }
  func.func @transform_6(%arg0: i32) -> (i32, i32) {
    %c0_i32 = arith.constant 0 : i32
    %c0_i32_0 = arith.constant 0 : i32
    %c0_i32_1 = arith.constant 0 : i32
    return %c0_i32, %c0_i32_0 : i32, i32
  }
  func.func @transform_7(%arg0: i32) -> (i32, i32) {
    %c0_i32 = arith.constant 0 : i32
    %c0_i32_0 = arith.constant 0 : i32
    %c0_i32_1 = arith.constant 0 : i32
    return %c0_i32, %c0_i32_0 : i32, i32
  }
  func.func @transform_8(%arg0: i32) -> (i32, i32) {
    %c0_i32 = arith.constant 0 : i32
    %c0_i32_0 = arith.constant 0 : i32
    %c0_i32_1 = arith.constant 0 : i32
    return %c0_i32, %c0_i32_0 : i32, i32
  }
  func.func @transform_9(%arg0: i32) -> (i32, i32) {
    %c0_i32 = arith.constant 0 : i32
    %c0_i32_0 = arith.constant 0 : i32
    %c0_i32_1 = arith.constant 0 : i32
    return %c0_i32, %c0_i32_0 : i32, i32
  }
  func.func @transform_10(%arg0: i32) -> (i32, i32) {
    %c0_i32 = arith.constant 0 : i32
    %c0_i32_0 = arith.constant 0 : i32
    %c0_i32_1 = arith.constant 0 : i32
    return %c0_i32, %c0_i32_0 : i32, i32
  }
  func.func @transform_11(%arg0: i32) -> (i32, i32) {
    %c0_i32 = arith.constant 0 : i32
    %c0_i32_0 = arith.constant 0 : i32
    %c0_i32_1 = arith.constant 0 : i32
    return %c0_i32, %c0_i32_0 : i32, i32
  }
  func.func @transform_12(%arg0: i32) -> (i32, i32) {
    %c0_i32 = arith.constant 0 : i32
    %c0_i32_0 = arith.constant 0 : i32
    %c0_i32_1 = arith.constant 0 : i32
    return %c0_i32, %c0_i32_0 : i32, i32
  }
  func.func @transform_13(%arg0: i32) -> (i32, i32) {
    %c0_i32 = arith.constant 0 : i32
    %c0_i32_0 = arith.constant 0 : i32
    %c0_i32_1 = arith.constant 0 : i32
    return %c0_i32, %c0_i32_0 : i32, i32
  }
  func.func @transform_14(%arg0: i32) -> (i32, i32) {
    %c0_i32 = arith.constant 0 : i32
    %c0_i32_0 = arith.constant 0 : i32
    %c0_i32_1 = arith.constant 0 : i32
    return %c0_i32, %c0_i32_0 : i32, i32
  }
  func.func @transform_15(%arg0: i32) -> (i32, i32) {
    %c0_i32 = arith.constant 0 : i32
    %c0_i32_0 = arith.constant 0 : i32
    %c0_i32_1 = arith.constant 0 : i32
    return %c0_i32, %c0_i32_0 : i32, i32
  }
  func.func @transform_16(%arg0: i32) -> (i32, i32) {
    %c0_i32 = arith.constant 0 : i32
    %c0_i32_0 = arith.constant 0 : i32
    %c0_i32_1 = arith.constant 0 : i32
    return %c0_i32, %c0_i32_0 : i32, i32
  }
  func.func @transform_17(%arg0: i32) -> (i32, i32) {
    %c0_i32 = arith.constant 0 : i32
    %c0_i32_0 = arith.constant 0 : i32
    %c0_i32_1 = arith.constant 0 : i32
    return %c0_i32, %c0_i32_0 : i32, i32
  }
  func.func @transform_18(%arg0: i32) -> (i32, i32) {
    %c0_i32 = arith.constant 0 : i32
    %c0_i32_0 = arith.constant 0 : i32
    %c0_i32_1 = arith.constant 0 : i32
    return %c0_i32, %c0_i32_0 : i32, i32
  }
  func.func @transform_19(%arg0: i32) -> (i32, i32) {
    %c0_i32 = arith.constant 0 : i32
    %c0_i32_0 = arith.constant 0 : i32
    return %arg0, %c0_i32 : i32, i32
  }
}

</mosaic_0001>

<bundles_post_ra>
// kernel: tpu_custom_call.1
= control target key start
LH: loop header
LB: loop body
LE: loop exit
PB: predicated region body
PF: predicated region fallthrough
CT: control target
= control target key end

     0   :  { %s1355_s0 = inlined_call_operand.vmem [shape: f32[8,16], index: 0, kind: input, shape index: {}]   ;;  %s1356_s1 = inlined_call_operand.vmem [shape: f32[8,16], index: 1, kind: input, shape index: {}]   ;;  %s1357_s2 = inlined_call_operand.vmem [shape: f32[8,16], index: 2, kind: input, shape index: {}]   ;;  %s1358_s3 = inlined_call_operand.vmem [shape: f32[8,8], index: 3, kind: input, shape index: {}]   ;;  %s1359_s4 = inlined_call_operand.vmem [shape: f32[8,8], index: 4, kind: input, shape index: {}]   ;;  %s1360_s5 = inlined_call_operand.vmem [shape: f32[8,8], index: 5, kind: input, shape index: {}]   ;;  %s1361_s6 = inlined_call_operand.vmem [shape: f32[16,128], index: 6, kind: input, shape index: {}]   ;;  %s1362_s7 = inlined_call_operand.vmem [shape: f32[16,128], index: 7, kind: input, shape index: {}]   ;;  %s1363_s8 = inlined_call_operand.vmem [shape: f32[16,128], index: 8, kind: input, shape index: {}]   ;;  %s1364_s9 = inlined_call_operand.vmem [shape: f32[8,128], index: 9, kind: input, shape index: {}]   ;;  %s1365_s10 = inlined_call_operand.vmem [shape: f32[8,128], index: 10, kind: input, shape index: {}]   ;;  %s1366_s11 = inlined_call_operand.vmem [shape: f32[8,128], index: 11, kind: input, shape index: {}]   ;;  %s1367_s12 = inlined_call_operand.vmem [shape: f32[1,128], index: 12, kind: input, shape index: {}]   ;;  %s1368_s13 = inlined_call_operand.vmem [shape: f32[128,64], index: 13, kind: input, shape index: {}]   ;;  %s1369_s14 = inlined_call_operand.vmem [shape: f32[1,64], index: 14, kind: input, shape index: {}]   ;;  %s1370_s15 = inlined_call_operand.vmem [shape: f32[64,32], index: 15, kind: input, shape index: {}]   ;;  %s1371_s16 = inlined_call_operand.vmem [shape: f32[1,32], index: 16, kind: input, shape index: {}]   ;;  %s1372_s17 = inlined_call_operand.vmem [shape: f32[32,8], index: 17, kind: input, shape index: {}]   ;;  %s1373_s18 = inlined_call_operand.vmem [shape: f32[1,8], index: 18, kind: input, shape index: {}]   ;;  %s1374_s19 = inlined_call_operand.hbm [shape: f32[8,8], index: 19, kind: output, shape index: {}]  }
   0x1   :  { %1375 = sst [smem:[#allocation5_spill]] %s1355_s0 }
   0x2   :  { %1376 = sst [smem:[#allocation6_spill]] %s1356_s1 }
   0x3   :  { %1377 = sst [smem:[#allocation7_spill]] %s1357_s2 }
   0x4   :  { %1378 = sst [smem:[#allocation8_spill]] %s1358_s3 }
   0x5   :  { %v71_v0 = vld [vmem:[%s1362_s7] sm:$0xff]  ;;  %v72_v1 = vld [vmem:[%s1362_s7 + $0x8] sm:$0xff]  ;;  %v1053_v2 = vmov 0.0|0.0   ;;  %vm1054_vm0 = vmmov 0   ;;  %v1055_v4 = vmov 0.0   ;;  %s1379_s28 = sld [smem:[#allocation6_spill]] }
   0x6   :  { %974 = vmatprep.subr.bf16.mxu1 %v1053_v2  ;;  %v975_v3 = vpack.c.bf16 %v72_v1, %v71_v0  ;;  %877 = vmatprep.mubr.msk.f32.mxu1 %vm1054_vm0, %v1055_v4  ;;  %v69_v5 = vld [vmem:[%s1361_s6] sm:$0xff]  ;;  %v70_v6 = vld [vmem:[%s1361_s6 + $0x8] sm:$0xff]  ;;  %vm73_vm1 = vcmask 130048   ;;  %s1380_s0 = sld [smem:[#allocation7_spill]]  ;;  %s1381_s24 = sld [smem:[#allocation5_spill]] }
   0x7   :  { %v220_v7 = vld [vmem:[%s1363_s8] sm:$0xff]  ;;  %980 = vmatprep.subr.bf16.mxu0 %v1053_v2  ;;  %v221_v8 = vld [vmem:[%s1363_s8 + $0x8] sm:$0xff]  ;;  %891 = vmatprep.mubr.msk.f32.mxu0 %vm1054_vm0, %v1055_v4  ;;  %v978_v10 = vpack.c.bf16 %v70_v6, %v69_v5 }
   0x8   :  { %976 = vmatpush3.bf16.msra.mxu1 %v975_v3  ;;  %v981_v11 = vpack.c.bf16 %v221_v8, %v220_v7  ;;  %v372_v13 = vld [vmem:[%s1365_s10] sm:$0xff]  ;;  %v532_v15 = vld [vmem:[%s1368_s13 + $0x8] sm:$0xff] }
   0x9   :  { %977 = vmatprep.subr.bf16.mxu1 %v1053_v2  ;;  %v531_v14 = vld [vmem:[%s1368_s13] sm:$0xff] }
   0xa   :  { %982 = vmatpush3.bf16.msra.mxu0 %v981_v11 }
   0xb   :  { %v64_v9 = vld [vmem:[%s1379_s28] sm:$0xff]  ;;  %899 = vmatprep.subr.mxu0 %v1055_v4 }
   0xc   :  { %v65_v12 = vld [vmem:[%s1380_s0] sm:$0xff]  ;;  %878 = vmatmul.mubr.msk.f32.vlgmr.msra.gmra.mrb[0].mxu1 %vm73_vm1, %v64_v9 }
   0xd   :  { %979 = vmatpush3.bf16.msra.mxu1 %v978_v10  ;;  %884 = vmatprep.mubr.msk.f32.mxu1 %vm1054_vm0, %v1055_v4  ;;  %v63_v16 = vld [vmem:[%s1381_s24] sm:$0xff] }
   0xe   :  { %24 = vsyncpa [#allocation3], 0  ;;  %894 = vmatprep.subr.mxu1 %v1055_v4  ;;  %v296_v17 = vld [vmem:[%s1364_s9] sm:$0xff]  ;;  %892 = vmatmul.mubr.msk.f32.vlgmr.msra.gmra.mrb[0].mxu0 %vm73_vm1, %v65_v12  ;;  %vm297_vm2 = vcmask 64512   ;;  %v984_v19 = vpack.c.bf16 %v532_v15, %v531_v14  ;;  %v533_v20 = vld [vmem:[%s1368_s13 + $0x10] sm:$0xff]  ;;  %vm640_vm3 = vcmask 523264  }
   0xf   :  { %900 = vmatpush3.msra.mxu0 %v372_v13  ;;  %901 = vmatprep.mubr.msk.f32.mxu0 %vm1054_vm0, %v1055_v4  ;;  %v67_v18 = vld [vmem:[%s1359_s4] sm:$0xff]  ;;  %v534_v21 = vld [vmem:[%s1368_s13 + $0x18] sm:$0xff]  ;;  %s1382_s4 = sld [smem:[#allocation8_spill]]  ;;  %v536_v26 = vld [vmem:[%s1368_s13 + $0x28] sm:$0xff]  ;;  %vm726_vm4 = vcmask 261120   ;;  %s1056_s24 = smov [#allocation2]  }
  0x10   :  { %885 = vmatmul.mubr.msk.f32.vlgmr.msra.gmra.mrb[2].mxu1 %vm73_vm1, %v63_v16  ;;  %983 = vmatprep.subr.bf16.mxu0 %v1053_v2  ;;  %v447_v23 = vld [vmem:[%s1366_s11] sm:$0xff]  ;;  %v987_v24 = vpack.c.bf16 %v534_v21, %v533_v20  ;;  %v537_v29 = vld [vmem:[%s1368_s13 + $0x30] sm:$0xff]  ;;  %v538_v30 = vld [vmem:[%s1368_s13 + $0x38] sm:$0xff] }
  0x11   :  { %895 = vmatpush3.msra.mxu1 %v296_v17  ;;  %896 = vmatprep.mubr.msk.f32.mxu1 %vm1054_vm0, %v1055_v4  ;;  %v535_v25 = vld [vmem:[%s1368_s13 + $0x20] sm:$0xff]  ;;  %v993_v31 = vpack.c.bf16 %v538_v30, %v537_v29  ;;  %v540_v33 = vld [vmem:[%s1368_s13 + $0x48] sm:$0xff]  ;;  %v541_v35 = vld [vmem:[%s1368_s13 + $0x50] sm:$0xff] }
  0x12   :  { %904 = vmatprep.subr.mxu1 %v1055_v4  ;;  %902 = vmatmul.mubr.msk.f32.vlgmr.msra.gmra.mrb[2].mxu0 %vm297_vm2, %v67_v18  ;;  %v68_v27 = vld [vmem:[%s1360_s5] sm:$0xff]  ;;  %v990_v28 = vpack.c.bf16 %v536_v26, %v535_v25  ;;  %v542_v36 = vld [vmem:[%s1368_s13 + $0x58] sm:$0xff]  ;;  %v544_v39 = vld [vmem:[%s1368_s13 + $0x68] sm:$0xff]  ;;  %s807_s5 = sshll.u32 %s1056_s24, 4  ;;  %s808_s5 = int_to_ptr.vmem [resolvable:$true] %s807_s5 }
  0x13   :  { %985 = vmatpush3.bf16.msra.mxu0 %v984_v19  ;;  %941 = vmatprep.mubr.msk.f32.mxu0 %vm1054_vm0, %v1055_v4  ;;  %v539_v32 = vld [vmem:[%s1368_s13 + $0x40] sm:$0xff]  ;;  %v999_v37 = vpack.c.bf16 %v542_v36, %v541_v35  ;;  %v545_v41 = vld [vmem:[%s1368_s13 + $0x70] sm:$0xff]  ;;  %v546_v42 = vld [vmem:[%s1368_s13 + $0x78] sm:$0xff]  ;;  %p1034_p1 = scmp.lt.s32.totalorder %s808_s5, %s808_s5 }
  0x14   :  { %986 = vmatprep.subr.bf16.mxu0 %v1053_v2  ;;  %v996_v34 = vpack.c.bf16 %v540_v33, %v539_v32  ;;  %v543_v38 = vld [vmem:[%s1368_s13 + $0x60] sm:$0xff]  ;;  %v1005_v43 = vpack.c.bf16 %v546_v42, %v545_v41  ;;  %v626_v45 = vld [vmem:[%s1370_s15 + $0x8] sm:$0xff]  ;;  %v627_v46 = vld [vmem:[%s1370_s15 + $0x10] sm:$0xff] }
  0x15   :  { %v66_v22 = vld [vmem:[%s1382_s4] sm:$0xff]  ;;  %v1002_v40 = vpack.c.bf16 %v544_v39, %v543_v38  ;;  %v628_v48 = vld [vmem:[%s1370_s15 + $0x18] sm:$0xff]  ;;  %v630_v51 = vld [vmem:[%s1370_s15 + $0x28] sm:$0xff] }
  0x16   :  { %897 = vmatmul.mubr.msk.f32.vlgmr.msra.gmra.mrb[4].mxu1 %vm297_vm2, %v66_v22  ;;  %v625_v44 = vld [vmem:[%s1370_s15] sm:$0xff]  ;;  %v1011_v49 = vpack.c.bf16 %v628_v48, %v627_v46  ;;  %v631_v11 = vld [vmem:[%s1370_s15 + $0x30] sm:$0xff]  ;;  %v632_v12 = vld [vmem:[%s1370_s15 + $0x38] sm:$0xff] }
  0x17   :  { %905 = vmatpush3.msra.mxu1 %v447_v23  ;;  %906 = vmatprep.mubr.msk.f32.mxu1 %vm1054_vm0, %v1055_v4  ;;  %v1008_v47 = vpack.c.bf16 %v626_v45, %v625_v44  ;;  %v629_v50 = vld [vmem:[%s1370_s15 + $0x20] sm:$0xff]  ;;  %v1017_v13 = vpack.c.bf16 %v632_v12, %v631_v11  ;;  %v716_v16 = vld [vmem:[%s1372_s17 + $0x8] sm:$0xff]  ;;  %v717_v22 = vld [vmem:[%s1372_s17 + $0x10] sm:$0xff] }
  0x18   :  { %1007 = vmatprep.subr.bf16.mxu1 %v1053_v2  ;;  %988 = vmatpush3.bf16.msra.mxu0 %v987_v24  ;;  %v1014_v52 = vpack.c.bf16 %v630_v51, %v629_v50  ;;  %v821_v6 = vld [vmem:[%s1367_s12] ss:$0 sm:$0xff]  ;;  %v718_v23 = vld [vmem:[%s1372_s17 + $0x18] sm:$0xff] }
  0x19   :  { %989 = vmatprep.subr.bf16.mxu0 %v1053_v2  ;;  %v822_v14 = vld [vmem:[%s1369_s14] ss:$0 sm:$0xff]  ;;  %v1023_v24 = vpack.c.bf16 %v718_v23, %v717_v22 }
  0x1a   :  { %907 = vmatmul.mubr.msk.f32.vlgmr.msra.gmra.mrb[6].mxu1 %vm297_vm2, %v68_v27  ;;  %v715_v15 = vld [vmem:[%s1372_s17] sm:$0xff]  ;;  %s1029_s17 = scalar_lea.vmem %s808_s5, 128 }
  0x1b   :  { %960 = vmatprep.mubr.msk.f32.mxu1 %vm1054_vm0, %v1055_v4  ;;  %1009 = vmatpush3.bf16.msra.mxu1 %v1008_v47  ;;  %v1020_v20 = vpack.c.bf16 %v716_v16, %v715_v15  ;;  %v823_v25 = vld [vmem:[%s1371_s16] ss:$0 sm:$0xff]  ;;  %p1030_p0 = scmp.ne.s32.totalorder %s808_s5, %s1029_s17  ;;  %p1035_p2 = scmp.lt.s32.totalorder %s1029_s17, %s1029_s17 }
  0x1c   :  { %991 = vmatpush3.bf16.msra.mxu0 %v990_v28  ;;  %1010 = vmatprep.subr.bf16.mxu1 %v1053_v2 }
  0x1d   :  { %992 = vmatprep.subr.bf16.mxu0 %v1053_v2  ;;  %p1036_p3 = por %p1035_p2, %p1034_p1 }
  0x1f   :  { %1012 = vmatpush3.bf16.msra.mxu1 %v1011_v49  ;;  %p1037_p4 = pnand %p1036_p3, %p1030_p0 }
  0x20   :  { %994 = vmatpush3.bf16.msra.mxu0 %v993_v31  ;;  %1013 = vmatprep.subr.bf16.mxu1 %v1053_v2 }
  0x21   :  { %995 = vmatprep.subr.bf16.mxu0 %v1053_v2 }
  0x23   :  { %1015 = vmatpush3.bf16.msra.mxu1 %v1014_v52 }
  0x24   :  { %997 = vmatpush3.bf16.msra.mxu0 %v996_v34  ;;  %1016 = vmatprep.subr.bf16.mxu1 %v1053_v2 }
  0x25   :  { %998 = vmatprep.subr.bf16.mxu0 %v1053_v2 }
  0x27   :  { %1018 = vmatpush3.bf16.msra.mxu1 %v1017_v13 }
  0x28   :  { %1000 = vmatpush3.bf16.msra.mxu0 %v999_v37  ;;  %1019 = vmatprep.subr.bf16.mxu1 %v1053_v2 }
  0x29   :  { %1001 = vmatprep.subr.bf16.mxu0 %v1053_v2 }
  0x2c   :  { %1003 = vmatpush3.bf16.msra.mxu0 %v1002_v40 }
  0x2d   :  { %1004 = vmatprep.subr.bf16.mxu0 %v1053_v2 }
  0x30   :  { %1006 = vmatpush3.bf16.msra.mxu0 %v1005_v43 }
  0xdf   :  { %v143_v53 = vpop.f32.mrb[0].mxu1 }
  0xe0   :  { %v879_v54 = vpop.f32.mrb[1].mxu1 }
  0xe1   :  { %v291_v55 = vpop.f32.mrb[0].mxu0 }
  0xe2   :  { %v893_v56 = vpop.f32.mrb[1].mxu0 }
  0xe3   :  { %v216_v57 = vpop.f32.mrb[2].mxu1 }
  0xe4   :  { %v217_v58 = vadd.f32 %v216_v57, %v143_v53  ;;  %v886_v59 = vpop.f32.mrb[3].mxu1 }
  0xe5   :  { %v442_v60 = vpop.f32.mrb[2].mxu0 }
  0xe6   :  { %v295_v61 = vadd.f32 %v291_v55, %v217_v58  ;;  %v903_v62 = vpop.f32.mrb[3].mxu0 }
  0xe9   :  { %v367_v63 = vpop.f32.mrb[4].mxu1 }
  0xea   :  { %v371_v0 = vadd.f32 %v367_v63, %v295_v61  ;;  %v898_v1 = vpop.f32.mrb[5].mxu1 }
  0xec   :  { %v446_v3 = vadd.f32 %v442_v60, %v371_v0 }
  0xed   :  { %v517_v5 = vpop.f32.mrb[6].mxu1 }
  0xee   :  { %v521_v7 = vadd.f32 %v517_v5, %v446_v3  ;;  %v908_v8 = vpop.f32.mrb[7].mxu1 }
  0xf0   :  { %v529_v9 = vadd.f32 %v821_v6, %v521_v7 }
  0xf2   :  { %v530_v10 = vmax.f32 %v529_v9, 0.0 }
  0xf4   :  { %942 = vmatmul.mubr.f32.vlgmr.msra.gmra.mrb[4].mxu0 %v530_v10 }
 0x1c7   :  { %v620_v17 = vpop.f32.mrb[4].mxu0 }
 0x1c8   :  { %v621_v18 = vadd.f32 %v822_v14, %v620_v17  ;;  %v943_v19 = vpop.f32.mrb[5].mxu0 }
 0x1ca   :  { %v624_v21 = vmax.f32 %v621_v18, 0.0 }
 0x1cc   :  { %961 = vmatmul.mubr.msk.f32.vlgmr.msra.gmra.mrb[8].mxu1 %vm640_vm3, %v624_v21 }
 0x1cd   :  { %1021 = vmatpush3.bf16.msra.mxu1 %v1020_v20  ;;  %971 = vmatprep.mubr.msk.f32.mxu1 %vm1054_vm0, %v1055_v4 }
 0x1ce   :  { %1022 = vmatprep.subr.bf16.mxu1 %v1053_v2  ;;  %v825_v2 = vld [vmem:[%s1373_s18] ss:$0 sm:$0xff] }
 0x1d1   :  { %1024 = vmatpush3.bf16.msra.mxu1 %v1023_v24 }
 0x29f   :  { %v710_v26 = vpop.f32.mrb[8].mxu1 }
 0x2a0   :  { %v711_v27 = vadd.f32 %v823_v25, %v710_v26  ;;  %v962_v28 = vpop.f32.mrb[9].mxu1 }
 0x2a2   :  { %v714_v4 = vmax.f32 %v711_v27, 0.0 }
 0x2a4   :  { %972 = vmatmul.mubr.msk.f32.vlgmr.msra.gmra.mrb[10].mxu1 %vm726_vm4, %v714_v4 }
 0x377   :  { %v796_v29 = vpop.f32.mrb[10].mxu1 }
 0x378   :  { %v797_v30 = vadd.f32 %v825_v2, %v796_v29  ;;  %v973_v31 = vpop.f32.mrb[11].mxu1 }
 0x37a   :  { %800 = vst.msk [vmem:[#allocation2] sm:$0xff] %vm297_vm2, %v797_v30 }
 0x37b   :  { %1040 = shalt.err (!%p1037_p4)
}
 0x37c   :  { %s1041_s13 = scalar_lea.hbm %s1374_s19, 128 }
 0x37d   :  { %p1042_p5 = scmp.ne.s32.totalorder %s1374_s19, %s1041_s13  ;;  %p1045_p6 = scmp.lt.u32.totalorder %s1041_s13, %s1374_s19 }
 0x37f   :  { %p1047_p7 = pnand %p1045_p6, %p1042_p5 }
 0x381   :  { %1050 = shalt.err (!%p1047_p7)
}
 0x382   :  { %810 = dma.vmem_to_hbm [thread:$0]  %s808_s5, 128, %s1374_s19, [#allocation3]  }
 0x383   :  { %1051 = dma.done.wait [#allocation3], 128  }
 0x384   :  { %1052 = vsyncadd [#allocation3], 4294967168 }
 0x385   :  { %814 = vsyncpa [#allocation3], 1 }

</bundles_post_ra>
